<compile_context>
chip_gen: v7x
topology: tpu7x:2x2x1
jax: 0.10.0
libtpu: 0.0.40
codegen_flags: <defaults>
</compile_context>

<pallas_src>
import jax
import jax.numpy as jnp
from jax.experimental import pallas as pl
from jax.experimental.pallas import tpu as pltpu


def _cdiv(a, b):
    return -(-a // b)


def _center_prior_kernel(pts_ref, gt_ref, mask_ref, out_ref):
    # pts_ref : (3, T)   rows = [point_x, point_y, 1/stride]
    # gt_ref  : (G, 6)   cols = [cx, cy, mean_x, mean_y, 1/(2sx^2), 1/(2sy^2)]
    # mask_ref: (G, T)   int8 inside_gt_bbox_mask, transposed
    # out_ref : (G, T)   center prior weights, transposed
    pts = pts_ref[...]
    px = pts[0:1, :]                      # (1, T)
    py = pts[1:2, :]
    inv_st = pts[2:3, :]
    g = gt_ref[...]                       # (G, 6)
    cx, cy = g[:, 0:1], g[:, 1:2]         # (G, 1)
    mx, my = g[:, 2:3], g[:, 3:4]
    ax, ay = g[:, 4:5], g[:, 5:6]
    dx = (px - cx) * inv_st - mx          # (G, T)
    dy = (py - cy) * inv_st - my
    # exp(-dx^2/(2sx^2)) * exp(-dy^2/(2sy^2)) fused into a single EUP exp.
    prior = jnp.exp(-(dx * dx * ax + dy * dy * ay))
    out_ref[...] = jnp.where(mask_ref[...] != 0, prior, 0.0)


def _choose_lane_tile(num_points, num_gt, vmem_budget_bytes):
    """Pick the lane tile (multiple of 128) under a double-buffered VMEM budget."""
    # bytes per lane column, double buffered: pts(3xf32) + mask(Gxint8) + out(Gxf32)
    per_lane = 2 * (3 * 4 + num_gt * 1 + num_gt * 4)
    max_tile = max(128, (vmem_budget_bytes // per_lane) // 128 * 128)
    p128 = _cdiv(num_points, 128) * 128
    if p128 <= 128:
        tile_p = 128
    else:
        # ~half the point range per step (>=2 parallel steps keeps both v7x
        # TensorCores busy; negligible extra per-step cost on v5e/v6e),
        # capped by the VMEM budget.
        tile_p = min(max_tile, _cdiv(_cdiv(num_points, 128), 2) * 128)
    num_tiles = _cdiv(p128, tile_p)
    return tile_p, num_tiles * tile_p


def center_prior_forward(anchor_points_list, strides, gt_bboxes, labels,
                         inside_gt_bbox_mask, mean, sigma,
                         vmem_budget_bytes=8 * 1024 * 1024):
    """JAX/Pallas equivalent of CenterPrior.forward (force_topk=False)."""
    num_points = sum(int(p.shape[0]) for p in anchor_points_list)
    num_gt = int(gt_bboxes.shape[0])
    if num_gt == 0:
        return jnp.zeros((num_points, 0), jnp.float32), inside_gt_bbox_mask

    # ---- glue (plain XLA): flatten levels, precompute per-gt coefficients --
    points = jnp.concatenate(anchor_points_list, axis=0).astype(jnp.float32)
    inv_stride = jnp.concatenate(
        [jnp.full((int(p.shape[0]),), 1.0 / float(s), jnp.float32)
         for p, s in zip(anchor_points_list, strides)], axis=0)     # (P,)

    gt_cx = ((gt_bboxes[:, 0] + gt_bboxes[:, 2]) * 0.5).astype(jnp.float32)
    gt_cy = ((gt_bboxes[:, 1] + gt_bboxes[:, 3]) * 0.5).astype(jnp.float32)
    inst_mean = mean[labels].astype(jnp.float32)                    # (G, 2)
    inst_sigma = sigma[labels].astype(jnp.float32)                  # (G, 2)
    ax = 1.0 / (2.0 * inst_sigma[:, 0] * inst_sigma[:, 0])
    ay = 1.0 / (2.0 * inst_sigma[:, 1] * inst_sigma[:, 1])
    gt_packed = jnp.stack(
        [gt_cx, gt_cy, inst_mean[:, 0], inst_mean[:, 1], ax, ay], axis=1)  # (G, 6)

    # ---- tile sizing + padding (points on the lane axis) -------------------
    tile_p, p_pad = _choose_lane_tile(num_points, num_gt, vmem_budget_bytes)
    pad = p_pad - num_points

    pts_packed = jnp.stack([points[:, 0], points[:, 1], inv_stride], axis=0)
    pts_packed = jnp.pad(pts_packed, ((0, 0), (0, pad)))            # (3, Pp)
    mask_t = jnp.pad(inside_gt_bbox_mask.astype(jnp.int8).T,
                     ((0, 0), (0, pad)))                            # (G, Pp) int8

    grid = (p_pad // tile_p,)
    out = pl.pallas_call(
        _center_prior_kernel,
        out_shape=jax.ShapeDtypeStruct((num_gt, p_pad), jnp.float32),
        grid_spec=pltpu.PrefetchScalarGridSpec(
            num_scalar_prefetch=0,
            grid=grid,
            in_specs=[pl.BlockSpec((3, tile_p), lambda i: (0, i)),
                      pl.BlockSpec((num_gt, 6), lambda i: (0, 0)),
                      pl.BlockSpec((num_gt, tile_p), lambda i: (0, i))],
            out_specs=pl.BlockSpec((num_gt, tile_p), lambda i: (0, i)),
        ),
        compiler_params=pltpu.CompilerParams(
            dimension_semantics=("parallel",)),
    )(pts_packed, gt_packed, mask_t)

    center_prior_weights = out[:, :num_points].T                    # (P, G)
    # TODO(synk): force_topk branch (column-wise topk + scatter into the mask
    # for gts with no inside points) not implemented; module defaults to False.
    return center_prior_weights, inside_gt_bbox_mask


# ----------------------------- reference (plain JAX, mirrors torch code) ----
def center_prior_reference(anchor_points_list, strides, gt_bboxes, labels,
                           inside_gt_bbox_mask, mean, sigma):
    gt_cx = (gt_bboxes[:, 0] + gt_bboxes[:, 2]) / 2.0
    gt_cy = (gt_bboxes[:, 1] + gt_bboxes[:, 3]) / 2.0
    gt_center = jnp.stack([gt_cx, gt_cy], axis=1)[None]      # (1, G, 2)
    inst_center = mean[labels][None]                          # (1, G, 2)
    inst_sigma = sigma[labels][None]                          # (1, G, 2)
    priors = []
    for pts, stride in zip(anchor_points_list, strides):
        p = pts[:, None, :]                                   # (P_l, 1, 2)
        dist = ((p - gt_center) / float(stride) - inst_center) ** 2
        cp = jnp.exp(-dist / (2.0 * inst_sigma ** 2)).prod(-1)
        priors.append(cp)
    w = jnp.concatenate(priors, axis=0)
    w = jnp.where(inside_gt_bbox_mask, w, 0.0)
    return w, inside_gt_bbox_mask


def _make_points(h, w, stride):
    ys = (jnp.arange(h, dtype=jnp.float32) + 0.5) * stride
    xs = (jnp.arange(w, dtype=jnp.float32) + 0.5) * stride
    yy, xx = jnp.meshgrid(ys, xs, indexing="ij")
    return jnp.stack([xx.reshape(-1), yy.reshape(-1)], axis=-1)  # (h*w, 2) xy


if __name__ == "__main__":
    key = jax.random.PRNGKey(0)
    num_classes = 80
    strides = (8, 16, 32, 64, 128)
    feat_sizes = [(16, 16), (8, 8), (4, 4), (2, 2), (1, 1)]
    num_gt = 8

    # deterministic parameters, as in nn.Module __init__
    mean = jnp.zeros((num_classes, 2), jnp.float32)
    sigma = jnp.ones((num_classes, 2), jnp.float32)

    # anchor points per level
    anchor_points_list = [_make_points(h, w, s)
                          for (h, w), s in zip(feat_sizes, strides)]

    # deterministic synthetic gt boxes / labels
    k1, k2, k3 = jax.random.split(key, 3)
    x1y1 = jax.random.uniform(k1, (num_gt, 2), minval=0.0, maxval=80.0)
    wh = jax.random.uniform(k2, (num_gt, 2), minval=16.0, maxval=64.0)
    gt_bboxes = jnp.concatenate([x1y1, x1y1 + wh], axis=1)          # (G, 4)
    labels = jax.random.randint(k3, (num_gt,), 0, num_classes)

    # inside_gt_bbox_mask: (num_points, num_gt)
    all_points = jnp.concatenate(anchor_points_list, axis=0)
    px = all_points[:, 0:1]
    py = all_points[:, 1:2]
    inside_gt_bbox_mask = ((px >= gt_bboxes[None, :, 0]) &
                           (px <= gt_bboxes[None, :, 2]) &
                           (py >= gt_bboxes[None, :, 1]) &
                           (py <= gt_bboxes[None, :, 3]))

    w_pallas, mask_out = center_prior_forward(
        anchor_points_list, strides, gt_bboxes, labels,
        inside_gt_bbox_mask, mean, sigma)
    jax.block_until_ready(w_pallas)

    w_ref, _ = center_prior_reference(
        anchor_points_list, strides, gt_bboxes, labels,
        inside_gt_bbox_mask, mean, sigma)

    assert w_pallas.shape == (all_points.shape[0], num_gt)
    assert bool(jnp.all(mask_out == inside_gt_bbox_mask))
    assert bool(jnp.allclose(w_pallas, w_ref, rtol=1e-5, atol=1e-6))

    print("KERNEL_OK")
</pallas_src>

<mosaic_0001>
module attributes {stable_mosaic.version = 11 : i64} {
  func.func @_center_prior_kernel(%arg0: i32, %arg1: memref<3x256xf32, #tpu.memory_space<vmem>>, %arg2: memref<8x6xf32, #tpu.memory_space<vmem>>, %arg3: memref<8x256xi8, #tpu.memory_space<vmem>>, %arg4: memref<8x256xf32, #tpu.memory_space<vmem>>) attributes {dimension_semantics = [#tpu.dimension_semantics<parallel>], iteration_bounds = array<i64: 2>, scalar_prefetch = 0 : i64, scratch_operands = 0 : i64, tpu.core_type = #tpu.core_type<tc>, window_params = [{transform_indices = @transform_0, window_bounds = array<i64: 3, 256>}, {pipeline_mode = #tpu.pipeline_mode<synchronous>, transform_indices = @transform_1, window_bounds = array<i64: 8, 6>}, {transform_indices = @transform_2, window_bounds = array<i64: 8, 256>}, {transform_indices = @transform_3, window_bounds = array<i64: 8, 256>}]} {
    %c0 = arith.constant 0 : index
    %c0_0 = arith.constant 0 : index
    %0 = vector.load %arg1[%c0, %c0_0] : memref<3x256xf32, #tpu.memory_space<vmem>>, vector<3x256xf32>
    %1 = vector.extract_strided_slice %0 {offsets = [0, 0], sizes = [1, 256], strides = [1, 1]} : vector<3x256xf32> to vector<1x256xf32>
    %2 = vector.extract_strided_slice %0 {offsets = [1, 0], sizes = [1, 256], strides = [1, 1]} : vector<3x256xf32> to vector<1x256xf32>
    %3 = vector.extract_strided_slice %0 {offsets = [2, 0], sizes = [1, 256], strides = [1, 1]} : vector<3x256xf32> to vector<1x256xf32>
    %c0_1 = arith.constant 0 : index
    %c0_2 = arith.constant 0 : index
    %4 = vector.load %arg2[%c0_1, %c0_2] : memref<8x6xf32, #tpu.memory_space<vmem>>, vector<8x6xf32>
    %5 = vector.extract_strided_slice %4 {offsets = [0, 0], sizes = [8, 1], strides = [1, 1]} : vector<8x6xf32> to vector<8x1xf32>
    %6 = vector.extract_strided_slice %4 {offsets = [0, 1], sizes = [8, 1], strides = [1, 1]} : vector<8x6xf32> to vector<8x1xf32>
    %7 = vector.extract_strided_slice %4 {offsets = [0, 2], sizes = [8, 1], strides = [1, 1]} : vector<8x6xf32> to vector<8x1xf32>
    %8 = vector.extract_strided_slice %4 {offsets = [0, 3], sizes = [8, 1], strides = [1, 1]} : vector<8x6xf32> to vector<8x1xf32>
    %9 = vector.extract_strided_slice %4 {offsets = [0, 4], sizes = [8, 1], strides = [1, 1]} : vector<8x6xf32> to vector<8x1xf32>
    %10 = vector.extract_strided_slice %4 {offsets = [0, 5], sizes = [8, 1], strides = [1, 1]} : vector<8x6xf32> to vector<8x1xf32>
    %11 = vector.broadcast %1 : vector<1x256xf32> to vector<8x256xf32>
    %12 = vector.broadcast %5 : vector<8x1xf32> to vector<8x256xf32>
    %13 = arith.subf %11, %12 : vector<8x256xf32>
    %14 = vector.broadcast %3 : vector<1x256xf32> to vector<8x256xf32>
    %15 = arith.mulf %13, %14 : vector<8x256xf32>
    %16 = vector.broadcast %7 : vector<8x1xf32> to vector<8x256xf32>
    %17 = arith.subf %15, %16 : vector<8x256xf32>
    %18 = vector.broadcast %2 : vector<1x256xf32> to vector<8x256xf32>
    %19 = vector.broadcast %6 : vector<8x1xf32> to vector<8x256xf32>
    %20 = arith.subf %18, %19 : vector<8x256xf32>
    %21 = vector.broadcast %3 : vector<1x256xf32> to vector<8x256xf32>
    %22 = arith.mulf %20, %21 : vector<8x256xf32>
    %23 = vector.broadcast %8 : vector<8x1xf32> to vector<8x256xf32>
    %24 = arith.subf %22, %23 : vector<8x256xf32>
    %25 = arith.mulf %17, %17 : vector<8x256xf32>
    %26 = vector.broadcast %9 : vector<8x1xf32> to vector<8x256xf32>
    %27 = arith.mulf %25, %26 : vector<8x256xf32>
    %28 = arith.mulf %24, %24 : vector<8x256xf32>
    %29 = vector.broadcast %10 : vector<8x1xf32> to vector<8x256xf32>
    %30 = arith.mulf %28, %29 : vector<8x256xf32>
    %31 = arith.addf %27, %30 : vector<8x256xf32>
    %cst = arith.constant 0.000000e+00 : f32
    %32 = vector.broadcast %cst : f32 to vector<8x256xf32>
    %33 = arith.subf %32, %31 : vector<8x256xf32>
    %34 = math.exp %33 : vector<8x256xf32>
    %c0_3 = arith.constant 0 : index
    %c0_4 = arith.constant 0 : index
    %35 = vector.load %arg3[%c0_3, %c0_4] : memref<8x256xi8, #tpu.memory_space<vmem>>, vector<8x256xi8>
    %c0_i8 = arith.constant 0 : i8
    %36 = vector.broadcast %c0_i8 : i8 to vector<8x256xi8>
    %37 = arith.cmpi ne, %35, %36 : vector<8x256xi8>
    %cst_5 = arith.constant 0.000000e+00 : f32
    %38 = vector.broadcast %cst_5 : f32 to vector<8x256xf32>
    %39 = arith.select %37, %34, %38 : vector<8x256xi1>, vector<8x256xf32>
    %c0_6 = arith.constant 0 : index
    %c0_7 = arith.constant 0 : index
    %40 = vector.load %arg4[%c0_6, %c0_7] : memref<8x256xf32, #tpu.memory_space<vmem>>, vector<8x256xf32>
    tpu.vector_store %arg4[%c0_6, %c0_7], %39 {strides = array<i32>} : memref<8x256xf32, #tpu.memory_space<vmem>>, vector<8x256xf32>,
    return
  }
  func.func @transform_0(%arg0: i32) -> (i32, i32) {
    %c0_i32 = arith.constant 0 : i32
    %c0_i32_0 = arith.constant 0 : i32
    return %c0_i32, %arg0 : i32, i32
  }
  func.func @transform_1(%arg0: i32) -> (i32, i32) {
    %c0_i32 = arith.constant 0 : i32
    %c0_i32_0 = arith.constant 0 : i32
    %c0_i32_1 = arith.constant 0 : i32
    return %c0_i32, %c0_i32_0 : i32, i32
  }
  func.func @transform_2(%arg0: i32) -> (i32, i32) {
    %c0_i32 = arith.constant 0 : i32
    %c0_i32_0 = arith.constant 0 : i32
    return %c0_i32, %arg0 : i32, i32
  }
  func.func @transform_3(%arg0: i32) -> (i32, i32) {
    %c0_i32 = arith.constant 0 : i32
    %c0_i32_0 = arith.constant 0 : i32
    return %c0_i32, %arg0 : i32, i32
  }
}

</mosaic_0001>

<bundles_post_ra>
// kernel: tpu_custom_call.1
= control target key start
LH: loop header
LB: loop body
LE: loop exit
PB: predicated region body
PF: predicated region fallthrough
CT: control target
= control target key end

     0   :  { %8 = vsyncpa [#allocation3], 0  ;;  %s1018_s0 = inlined_call_operand.hbm [shape: f32[3,512], index: 0, kind: input, shape index: {}]   ;;  %s1019_s1 = inlined_call_operand.hbm [shape: f32[8,6], index: 1, kind: input, shape index: {}]   ;;  %s1020_s2 = inlined_call_operand.hbm [shape: s8[8,512], index: 2, kind: input, shape index: {}]   ;;  %s1021_s3 = inlined_call_operand.hbm [shape: f32[8,512], index: 3, kind: output, shape index: {}]  }
   0x1   :  { %10 = vsyncpa [#allocation3 + $0x1], 0 }
   0x2   :  { %11 = vsyncpa [#allocation6], 0 }
   0x3   :  { %12 = vsyncpa [#allocation4], 0 }
   0x4   :  { %14 = vsyncpa [#allocation4 + $0x1], 0  ;;  %s771_s12 = smov 0   ;;  %s773_s13 = smov 0  }
   0x5   :  { %s775_s14 = smov 0   ;;  %s777_s15 = smov 0  }
   0x6 LB: > { %s792_s16 = sadd.s32 1, %s739_s15   ;;  %s27_s17 = sadd.s32 1, %s735_s14  ;;  %s739_s15 = sphi %s777_s15, %s1044_s15   ;;  %s735_s14 = sphi %s775_s14, %s1043_s14   ;;  %s731_s13 = sphi %s773_s13, %s1042_s13   ;;  %s727_s12 = sphi %s771_s12, %s1041_s12  }
   0x7   : > { %s24_s18 = ssub.s32 %s739_s15, %s792_s16  ;;  %p34_p0 = scmp.ne.s32.totalorder %s735_s14, %s731_s13 }
   0x8   : > { %p25_p1 = scmp.eq.s32.totalorder %s24_s18, 0  ;;  %p35_p2 = scmp.eq.s32.totalorder %s739_s15, 0 }
   0x9   : > { %p525_p4 = scmp.lt.s32.totalorder %s739_s15, 2  ;;  %s148_s20 = sand.u32 1, %s739_s15  }
   0xa   : > { %s803_s19 = scalar_select %p25_p1, %s735_s14, %s27_s17  }
   0xb   : > { %p36_p5 = por %p35_p2, %p34_p0  ;;  %s150_s21 = sand.u32 1, %s735_s14  }
   0xc   : > { %s480_s22 = sshll.u32 %s150_s21, 3  ;;  %s496_s23 = sshll.u32 %s739_s15, 7 }
   0xd   : > { %s814_s26 = scalar_lea.hbm %s1018_s0, %s496_s23  ;;  %s152_s27 = scalar_lea.vmem [#allocation2], %s480_s22 }
   0xe   : > { %s160_s28 = sshll.u32 %s152_s27, 4  ;;  %p816_p6 = pnand %p525_p4, %p36_p5  ;;  %s820_s28 = int_to_ptr.vmem [resolvable:$true] %s160_s28 }
   0xf   : > { %s822_s30 = sshll.u32 %s150_s21, 2  ;;  %s824_s4 = scalar_lea.sflag [#allocation3], %s148_s20 }
  0x10   : > { %s577_s5 = scalar_lea.hbm %s814_s26, 128  ;;  %p579_p8 = pneg %p816_p6 }
  0x11   : > { %p578_p7 = scmp.ne.s32.totalorder %s814_s26, %s577_s5  ;;  %s582_s8 = scalar_lea.hbm %s1018_s0, 256 }
  0x12   : > { %p583_p11 = scmp.lt.u32.totalorder %s814_s26, %s1018_s0  ;;  %p584_p12 = scmp.lt.u32.totalorder %s582_s8, %s577_s5 }
  0x13   : > { %p580_p9 = pnand %p579_p8, %p578_p7  ;;  %p586_p1 = scmp.lt.u32.totalorder %s577_s5, %s814_s26 }
  0x14   : > { %p585_p13 = por %p584_p12, %p583_p11 }
  0x15   : > { %p581_p10 = pneg %p580_p9 }
  0x16   : > { %p587_p2 = por %p586_p1, %p585_p13 }
  0x18   : > { %p588_p4 = pnand %p587_p2, %p581_p10 }
  0x1a   : > { %591 = shalt.err (!%p588_p4)
}
  0x1b   : > { %s592_s11 = scalar_lea.vmem %s820_s28, 128  ;;  %s741_s17 = smov [#allocation2]  }
  0x1c   : > { %p593_p5 = scmp.ne.s32.totalorder %s820_s28, %s592_s11  ;;  %s597_s18 = sshll.u32 %s741_s17, 4  ;;  %s598_s18 = int_to_ptr.vmem [resolvable:$false] %s597_s18 }
  0x1d   : > { %s599_s20 = scalar_lea.vmem %s598_s18, 256  ;;  %p600_p3 = scmp.lt.s32.totalorder %s820_s28, %s598_s18 }
  0x1e   : > { %p595_p7 = pnand %p593_p5, %p579_p8  ;;  %p601_p11 = scmp.lt.s32.totalorder %s599_s20, %s592_s11 }
  0x20   : > { %p596_p9 = pneg %p595_p7  ;;  %p602_p12 = por %p601_p11, %p600_p3 }
  0x22   : > { %p603_p13 = pnand %p602_p12, %p596_p9 }
  0x24   : > { %606 = shalt.err (!%p603_p13)
}
  0x25   : > { %516 = dma.hbm_to_vmem [thread:$0]  (!%p816_p6), %s814_s26, 128, %s820_s28, %s824_s4  }
  0x26   : > { %s853_s21 = sadd.s32 4294967295, %s739_s15   ;;  %s476_s22 = sadd.s32 4294967294, %s739_s15  }
  0x27   : > { %p40_p3 = scmp.ne.s32.totalorder %s731_s13, %s727_s12  ;;  %p1022_p10 = scmp.eq.s32.totalorder %s853_s21, 0 }
  0x28   : > { %p111_p1 = scmp.eq.s32.totalorder %s853_s21, 1  ;;  %p117_p2 = scmp.eq.s32.totalorder %s476_s22, 1 }
  0x29   : > { %p477_p4 = scmp.ge.s32.totalorder %s739_s15, 1  ;;  %p863_p5 = por %p1022_p10, %p40_p3 }
  0x2a   : > { %p870_p7 = por %p111_p1, %p34_p0  ;;  %p874_p9 = por %p117_p2, %p40_p3 }
  0x2b   : > { %s1028_s23 = scalar_select %p863_p5, 1, 0 }
  0x2c   : > { %s1029_s24 = scalar_select %p870_p7, 1, 0 }
  0x2d   : > { %s1030_s25 = scalar_select %p874_p9, 1, 0 }
  0x2e   : > { %p124_p11 = scmp.lt.s32.totalorder %s739_s15, 3  ;;  %s742_s27 = smov [#allocation5]  }
  0x2f   : > { %s137_s28 = sshll.u32 %s742_s27, 4  ;;  %s497_s5 = sshll.u32 %s739_s15, 6  ;;  %s883_s28 = int_to_ptr.vmem [resolvable:$true] %s137_s28 }
  0x30   : > { %p879_p12 = pnand %p477_p4, %p124_p11  ;;  %s891_s8 = scalar_lea.hbm %s1020_s2, %s497_s5 }
  0x31   : > { %s171_s9 = scalar_lea.vmem [#allocation7], %s822_s30  ;;  %s607_s17 = scalar_lea.hbm %s891_s8, 64 }
  0x32   : > { %s1031_s26 = scalar_select %p879_p12, 1, 0 }
  0x33   : > { %p509_p0 = pneg %p879_p12  ;;  %s179_s10 = sshll.u32 %s171_s9, 4  ;;  %s180_s10 = int_to_ptr.vmem [resolvable:$true] %s179_s10 }
  0x34   : > { %p608_p3 = scmp.ne.s32.totalorder %s891_s8, %s607_s17  ;;  %s612_s22 = scalar_lea.hbm %s1020_s2, 128 }
  0x35   : > { %p896_p13 = pnand %p509_p0, %p1022_p10  ;;  %p613_p4 = scmp.lt.u32.totalorder %s891_s8, %s1020_s2 }
  0x36   : > { %p610_p1 = pnand %p608_p3, %p579_p8  ;;  %p614_p11 = scmp.lt.u32.totalorder %s612_s22, %s607_s17 }
  0x37   : > { %s1032_s11 = scalar_select %p896_p13, 1, 0 }
  0x38   : > { %p611_p2 = pneg %p610_p1  ;;  %p615_p0 = por %p614_p11, %p613_p4 }
  0x39   : > { %p616_p10 = scmp.lt.u32.totalorder %s607_s17, %s891_s8 }
  0x3b   : > { %p617_p9 = por %p616_p10, %p615_p0 }
  0x3d   : > { %p618_p7 = pnand %p617_p9, %p611_p2 }
  0x3f   : > { %621 = shalt.err (!%p618_p7)
}
  0x40   : > { %s622_s30 = scalar_lea.vmem %s180_s10, 64  ;;  %s743_s6 = smov [#allocation7]  }
  0x41   : > { %p623_p5 = scmp.ne.s32.totalorder %s180_s10, %s622_s30  ;;  %s627_s7 = sshll.u32 %s743_s6, 4  ;;  %s628_s7 = int_to_ptr.vmem [resolvable:$false] %s627_s7 }
  0x42   : > { %s629_s9 = scalar_lea.vmem %s628_s7, 128  ;;  %p630_p12 = scmp.lt.s32.totalorder %s180_s10, %s628_s7 }
  0x43   : > { %p625_p3 = pnand %p623_p5, %p579_p8  ;;  %p631_p13 = scmp.lt.s32.totalorder %s629_s9, %s622_s30 }
  0x45   : > { %p626_p1 = pneg %p625_p3  ;;  %p632_p4 = por %p631_p13, %p630_p12 }
  0x47   : > { %p633_p11 = pnand %p632_p4, %p626_p1 }
  0x49   : > { %636 = shalt.err (!%p633_p11)
}
  0x4a   : > { %519 = dma.hbm_to_vmem [thread:$0]  (!%p816_p6), %s891_s8, 64, %s180_s10, %s824_s4  }
  0x4b   : > { %s637_s20 = scalar_lea.hbm %s1019_s1, 128  ;;  %p1033_p10 = scmp.ne.s32.totalorder %s1032_s11, 0 }
  0x4c   : > { %p638_p8 = scmp.ne.s32.totalorder %s1019_s1, %s637_s20  ;;  %p644_p12 = scmp.lt.u32.totalorder %s637_s20, %s1019_s1 }
  0x4d   : > { %p639_p5 = pneg %p1033_p10 }
  0x4f   : > { %p640_p7 = pnand %p639_p5, %p638_p8 }
  0x51   : > { %p641_p9 = pneg %p640_p7 }
  0x53   : > { %p646_p13 = pnand %p644_p12, %p641_p9 }
  0x55   : > { %649 = shalt.err (!%p646_p13)
}
  0x56   : > { %s650_s29 = scalar_lea.vmem %s883_s28, 128  ;;  %p658_p3 = scmp.lt.s32.totalorder %s883_s28, %s883_s28 }
  0x57   : > { %p651_p6 = scmp.ne.s32.totalorder %s883_s28, %s650_s29  ;;  %p659_p1 = scmp.lt.s32.totalorder %s650_s29, %s650_s29 }
  0x59   : > { %p653_p2 = pnand %p651_p6, %p639_p5  ;;  %p660_p4 = por %p659_p1, %p658_p3 }
  0x5b   : > { %p654_p0 = pneg %p653_p2 }
  0x5d   : > { %p661_p11 = pnand %p660_p4, %p654_p0 }
  0x5f   : > { %664 = shalt.err (!%p661_p11)
}
  0x60   : > { %512 = dma.hbm_to_vmem [thread:$0]  (!%p1033_p10), %s1019_s1, 128, %s883_s28, [#allocation6]  }
  0x61   : > { %p1034_p8 = scmp.ne.s32.totalorder %s1031_s26, 0 }
  0x62   : > { %s190_s10 = sand.u32 (!%p1034_p8), 1, %s853_s21   ;;  %s945_s6 = sand.u32 (!%p1034_p8), 1, %s731_s13  }
  0x63   : > { %188 = sbr.rel (%p1034_p8) target bundleno = 291 (0x123), region = 32  ;;  %s487_s7 = sshll.u32 (!%p1034_p8), %s945_s6, 3 }
  0x64   : > { %s191_s9 = scalar_lea.sflag (!%p1034_p8), [#allocation3], %s190_s10  ;;  %s948_s17 = scalar_lea.vmem (!%p1034_p8), [#allocation2], %s487_s7 }
  0x65   : > { %p1035_p5 = scmp.ne.s32.totalorder (!%p1034_p8), %s1028_s23, 0 }
  0x6a   : > { %710 = dma.done.wait (%p1035_p5), %s191_s9, 128  }
  0x6b   : > { %712 = vsyncadd (%p1035_p5), %s191_s9, 4294967168  ;;  %p1036_p10 = scmp.eq.s32.totalorder %s853_s21, 0 }
  0x6d   : > { %714 = dma.done.wait (%p1036_p10), [#allocation6], 128   ;;  %p1037_p7 = pmov %p1036_p10 }
  0x6e   : > { %s489_s26 = sshll.u32 %s945_s6, 2 }
  0x6f   : > { %716 = vsyncadd (%p1037_p7), [#allocation6], 4294967168  ;;  %s959_s28 = scalar_lea.vmem [#allocation7], %s489_s26 }
  0x70   : > { %718 = dma.done.wait (%p1035_p5), %s191_s9, 64  }
  0x71   : > { %720 = vsyncadd (%p1035_p5), %s191_s9, 4294967232  ;;  %v744_v0 = vmov 2   ;;  %v745_v1 = vmov 0   ;;  %v241_v2 = vld [vmem:[#allocation5] sm:$0xff]  ;;  %v746_v3 = vmov 3   ;;  %v747_v4 = vmov 1  }
  0x72   : > { %569 = vset.pattern.permute.xlu1 %v744_v0  ;;  %567 = vset.pattern.permute.xlu0 %v745_v1  ;;  %v748_v5 = vmov 4   ;;  %v749_v6 = vmov 5   ;;  %v243_v7 = vlaneseq  ;;  %v240_v11 = vld [vmem:[%s948_s17] sm:$0x77]  ;;  %v350_v56 = vld [vmem:[%s959_s28] sm:$0xf] }
  0x73   : > { %289 = vperm.xlu1 %569, %v241_v2   ;;  %263 = vperm.xlu0 %567, %v241_v2   ;;  %vm351_vm0 = vnez %v350_v56  ;;  %s490_s23 = sshll.u32 %s945_s6, 4  ;;  %s498_s11 = sshll.u32 %s853_s21, 8 }
  0x74   : > { %v244_v8 = vshrl.u32 %v243_v7, 7  ;;  %v352_v61 = vsel %vm351_vm0, 16843009, %v745_v1  ;;  %s234_s18 = scalar_lea.vmem [#allocation8], %s490_s23  ;;  %s974_s5 = scalar_lea.hbm %s1021_s3, %s498_s11 }
  0x75   : > { %v353_v62 = vunpack.c.0.s8 %v352_v61  ;;  %v354_v63 = vunpack.c.1.s8 %v352_v61  ;;  %s376_s20 = sshll.u32 %s234_s18, 4  ;;  %s362_s21 = scalar_lea.sflag [#allocation4], %s945_s6  ;;  %s976_s20 = int_to_ptr.vmem [resolvable:$true] %s376_s20 }
  0x76   : > { %v245_v9 = vsub.s32 0, %v244_v8  ;;  %v249_v10 = vsub.s32 4, %v244_v8  ;;  %v270_v12 = vsub.s32 2, %v244_v8  ;;  %v274_v13 = vsub.s32 6, %v244_v8  ;;  %s665_s30 = scalar_lea.vmem %s976_s20, 256  ;;  %p1038_p12 = scmp.ne.s32.totalorder %s1029_s24, 0 }
  0x77   : > { %570 = vset.pattern.permute.xlu1 %v746_v3  ;;  %568 = vset.pattern.permute.xlu0 %v747_v4  ;;  %v296_v16 = vsub.s32 1, %v244_v8  ;;  %v300_v17 = vsub.s32 5, %v244_v8  ;;  %vm355_vm1 = vcmp.ne.s32.totalorder %v353_v62, 0  ;;  %vm356_vm2 = vcmp.ne.s32.totalorder %v354_v63, 0  ;;  %p666_p9 = scmp.ne.s32.totalorder %s976_s20, %s665_s30  ;;  %s750_s29 = smov [#allocation8]  }
  0x78   : > { %321 = vperm.xlu1 %570, %v241_v2   ;;  %313 = vperm.xlu0 %568, %v241_v2   ;;  %v246_v14 = vrot.slane %v240_v11, %v245_v9  ;;  %v250_v15 = vrot.slane %v240_v11, %v249_v10  ;;  %v271_v18 = vrot.slane %v240_v11, %v270_v12  ;;  %s669_s4 = sshll.u32 %s750_s29, 4  ;;  %s670_s4 = int_to_ptr.vmem [resolvable:$false] %s669_s4 }
  0x79   : > { %v275_v19 = vrot.slane %v240_v11, %v274_v13  ;;  %v297_v22 = vrot.slane %v240_v11, %v296_v16  ;;  %v301_v23 = vrot.slane %v240_v11, %v300_v17  ;;  %p667_p13 = pnand %p666_p9, %p1038_p12  ;;  %s671_s8 = scalar_lea.vmem %s670_s4, 512 }
  0x7a   : > { %v256_v20 = vrot.slane %v246_v14, %v245_v9  ;;  %v260_v21 = vrot.slane %v250_v15, %v245_v9  ;;  %v281_v26 = vrot.slane %v271_v18, %v270_v12  ;;  %p672_p2 = scmp.lt.s32.totalorder %s976_s20, %s670_s4  ;;  %p673_p0 = scmp.lt.s32.totalorder %s671_s8, %s665_s30 }
  0x7b   : > { %v285_v27 = vrot.slane %v275_v19, %v270_v12  ;;  %v307_v30 = vrot.slane %v297_v22, %v296_v16  ;;  %v311_v31 = vrot.slane %v301_v23, %v296_v16  ;;  %p668_p6 = pneg %p667_p13 }
  0x7c   : > { %571 = vset.pattern.permute.xlu1 %v748_v5  ;;  %572 = vset.pattern.permute.xlu0 %v749_v6  ;;  %p674_p3 = por %p673_p0, %p672_p2 }
  0x7d   : > { %329 = vperm.xlu1 %571, %v241_v2   ;;  %337 = vperm.xlu0 %572, %v241_v2  }
  0x7e   : > { %p675_p1 = pnand %p674_p3, %p668_p6 }
  0xf2   : > { %v264_v24 = vpop.permute.xlu0 %263  ;;  %v290_v25 = vpop.permute.xlu1 %289 }
  0xf3   : > { %v266_v28 = vsub.f32 %v256_v20, %v264_v24  ;;  %v267_v29 = vsub.f32 %v260_v21, %v264_v24 }
  0xf5   : > { %v286_v32 = vmul.f32 %v281_v26, %v266_v28  ;;  %v287_v33 = vmul.f32 %v285_v27, %v267_v29 }
  0xf7   : > { %v314_v34 = vpop.permute.xlu0 %313  ;;  %v322_v35 = vpop.permute.xlu1 %321  ;;  %v292_v38 = vsub.f32 %v286_v32, %v290_v25  ;;  %v293_v39 = vsub.f32 %v287_v33, %v290_v25 }
  0xf8   : > { %v316_v36 = vsub.f32 %v307_v30, %v314_v34  ;;  %v317_v37 = vsub.f32 %v311_v31, %v314_v34 }
  0xf9   : > { %v326_v46 = vmul.f32 %v292_v38, %v292_v38  ;;  %v327_v47 = vmul.f32 %v293_v39, %v293_v39 }
  0xfa   : > { %v318_v40 = vmul.f32 %v316_v36, %v281_v26  ;;  %v319_v41 = vmul.f32 %v317_v37, %v285_v27 }
  0xfc   : > { %v324_v42 = vsub.f32 %v318_v40, %v322_v35  ;;  %v325_v43 = vsub.f32 %v319_v41, %v322_v35  ;;  %v330_v44 = vpop.permute.xlu1 %329  ;;  %v338_v45 = vpop.permute.xlu0 %337 }
  0xfd   : > { %v332_v50 = vmul.f32 %v330_v44, %v326_v46  ;;  %v333_v51 = vmul.f32 %v330_v44, %v327_v47 }
  0xfe   : > { %v334_v48 = vmul.f32 %v324_v42, %v324_v42  ;;  %v335_v49 = vmul.f32 %v325_v43, %v325_v43 }
 0x100   : > { %v340_v52 = vmul.f32 %v338_v45, %v334_v48  ;;  %v341_v53 = vmul.f32 %v338_v45, %v335_v49 }
 0x102   : > { %v342_v54 = vadd.f32 %v340_v52, %v332_v50  ;;  %v343_v55 = vadd.f32 %v341_v53, %v333_v51 }
 0x104   : > { %v344_v57 = vsub.f32 0.0, %v342_v54  ;;  %v345_v58 = vsub.f32 0.0, %v343_v55 }
 0x106   : > { %v346_v59 = vmul.f32 1.442695, %v344_v57  ;;  %v348_v60 = vmul.f32 1.442695, %v345_v58 }
 0x108   : > { %573 = vpow2.f32 %v346_v59 }
 0x109   : > { %575 = vpow2.f32 %v348_v60 }
 0x112   : > { %v574_v0 = vpop.eup %573 }
 0x113   : > { %v576_v2 = vpop.eup %575  ;;  %v357_v3 = vsel %vm355_vm1, %v574_v0, 0.0 }
 0x114   : > { %v358_v1 = vsel %vm356_vm2, %v576_v2, 0.0  ;;  %359 = vst [vmem:[%s234_s18] sm:$0xff] %v357_v3 }
 0x115   : > { %360 = vst [vmem:[%s234_s18 + $0x8] sm:$0xff] %v358_v1 }
 0x116   : > { %678 = shalt.err (!%p675_p1)
}
 0x117   : > { %s679_s10 = scalar_lea.hbm %s974_s5, 256  ;;  %s683_s9 = scalar_lea.hbm %s1021_s3, 512 }
 0x118   : > { %p680_p4 = scmp.ne.s32.totalorder %s974_s5, %s679_s10  ;;  %p684_p5 = scmp.lt.u32.totalorder %s974_s5, %s1021_s3 }
 0x119   : > { %p685_p10 = scmp.lt.u32.totalorder %s683_s9, %s679_s10  ;;  %p687_p9 = scmp.lt.u32.totalorder %s679_s10, %s974_s5 }
 0x11a   : > { %p681_p11 = pnand %p680_p4, %p1038_p12 }
 0x11b   : > { %p686_p7 = por %p685_p10, %p684_p5 }
 0x11c   : > { %p682_p8 = pneg %p681_p11 }
 0x11d   : > { %p688_p13 = por %p687_p9, %p686_p7 }
 0x11f   : > { %p689_p6 = pnand %p688_p13, %p682_p8 }
 0x121   : > { %692 = shalt.err (!%p689_p6)
}
 0x122   : > { %507 = dma.vmem_to_hbm [thread:$0]  (%p1038_p12), %s976_s20, 256, %s974_s5, %s362_s21  }
 0x123 PF: > { %s388_s28 = sand.u32 1, %s727_s12   ;;  %p1039_p2 = scmp.ne.s32.totalorder %s1030_s25, 0 }
 0x124   : > { %p1040_p0 = scmp.ge.s32.totalorder %s739_s15, 2  ;;  %s389_s23 = scalar_lea.sflag [#allocation4], %s388_s28 }
 0x126   : > { %p521_p3 = pnand %p1040_p0, %p1039_p2 }
 0x128   : > { %722 = dma.done.wait (!%p521_p3), %s389_s23, 256  }
 0x129   : > { %724 = vsyncadd (!%p521_p3), %s389_s23, 4294967040  ;;  %p17_p1 = scmp.ge.s32.totalorder %s792_s16, 4   ;;  %s1041_s12 = smov %s731_s13 }
 0x12a   : > { %s1042_s13 = smov %s735_s14  ;;  %s1043_s14 = smov %s803_s19 }
 0x12b   : > { %s1044_s15 = smov %s792_s16  ;;  %19 = sbr.rel (!%p17_p1) target bundleno = 6 (0x6), region = 92 }
 0x132   :  { %394 = vsyncpa [#allocation3], 1 }
 0x133   :  { %396 = vsyncpa [#allocation3 + $0x1], 1 }
 0x134   :  { %397 = vsyncpa [#allocation6], 1 }
 0x135   :  { %398 = vsyncpa [#allocation4], 1 }
 0x136   :  { %400 = vsyncpa [#allocation4 + $0x1], 1 }

</bundles_post_ra>
